<compile_context>
chip_gen: v7x
topology: tpu7x:2x2x1
jax: 0.10.0
libtpu: 0.0.40
codegen_flags: <defaults>
</compile_context>

<pallas_src>
import jax
import jax.numpy as jnp
from jax.experimental import pallas as pl
from jax.experimental.pallas import tpu as pltpu


def _mm_small(a, b):
    # Small (n x n) matmul as n broadcast-multiply-adds on the VPU:
    #   out[i, :] = sum_k a[i, k] * b[k, :]
    # Fully unrolled at trace time (n is static and tiny).
    k_dim = a.shape[1]
    acc = a[:, 0:1] * b[0:1, :]
    for k in range(1, k_dim):
        acc = acc + a[:, k:k + 1] * b[k:k + 1, :]
    return acc


def _model_kernel(x1_ref, x2_ref, inp_ref, out_ref):
    x1 = x1_ref[...]
    x2 = x2_ref[...]
    inp = inp_ref[...]

    v1 = _mm_small(x1, x2)      # v1 = x1 @ x2
    v3 = _mm_small(v1, v1)      # v3 = v1 @ v1
    v3 = _mm_small(v3, v3)      # v3 = v3 @ v3

    out_ref[...] = (v3 + inp).astype(out_ref.dtype)


def model_forward(x1, x2, inp):
    n, m = inp.shape
    # The matmul chain (v1 @ v1, etc.) only makes sense for square, equally
    # shaped operands -- assert instead of silently miscomputing.
    assert n == m, f"inp must be square, got {inp.shape}"
    assert x1.shape == (n, m) and x2.shape == (n, m), (x1.shape, x2.shape, inp.shape)
    assert x1.dtype == x2.dtype == inp.dtype, (x1.dtype, x2.dtype, inp.dtype)

    itemsize = jnp.dtype(inp.dtype).itemsize
    flops = 3 * 2 * n * n * n + n * m            # three matmuls + final add
    bytes_accessed = 4 * n * m * itemsize        # x1, x2, inp in; out out

    return pl.pallas_call(
        _model_kernel,
        out_shape=jax.ShapeDtypeStruct((n, m), inp.dtype),
        # Full-array operands pinned to VMEM: no blocking/pipelining machinery
        # for a latency-bound kernel; the three small transfers overlap.
        in_specs=[pl.BlockSpec(memory_space=pltpu.MemorySpace.VMEM) for _ in range(3)],
        out_specs=pl.BlockSpec(memory_space=pltpu.MemorySpace.VMEM),
        # Tiny-cost hint so XLA's scheduler does not treat the custom call as
        # expensive.
        cost_estimate=pl.CostEstimate(
            flops=flops, transcendentals=0, bytes_accessed=bytes_accessed),
    )(x1, x2, inp)


def _reference(x1, x2, inp):
    v1 = x1 @ x2
    v3 = v1 @ v1
    v3 = v3 @ v3
    return v3 + inp


if __name__ == "__main__":
    key = jax.random.PRNGKey(0)
    k1, k2, k3 = jax.random.split(key, 3)
    # Shapes straight from the PyTorch module: three (3, 3) float32 tensors.
    x1 = jax.random.normal(k1, (3, 3), dtype=jnp.float32)
    x2 = jax.random.normal(k2, (3, 3), dtype=jnp.float32)
    inp = jax.random.normal(k3, (3, 3), dtype=jnp.float32)

    ref = _reference(x1, x2, inp)

    out = model_forward(x1, x2, inp)
    out = jax.block_until_ready(out)

    assert out.shape == (3, 3)
    assert out.dtype == inp.dtype
    assert jnp.allclose(out, ref, atol=1e-4, rtol=1e-4), (out, ref)

    print("KERNEL_OK")
</pallas_src>

<mosaic_0001>
module attributes {stable_mosaic.version = 11 : i64} {
  func.func @_model_kernel(%arg0: memref<3x3xf32, #tpu.memory_space<vmem>>, %arg1: memref<3x3xf32, #tpu.memory_space<vmem>>, %arg2: memref<3x3xf32, #tpu.memory_space<vmem>>, %arg3: memref<3x3xf32, #tpu.memory_space<vmem>>) attributes {dimension_semantics = [], scalar_prefetch = 0 : i64, scratch_operands = 0 : i64, tpu.core_type = #tpu.core_type<tc>} {
    %c0 = arith.constant 0 : index
    %c0_0 = arith.constant 0 : index
    %0 = vector.load %arg0[%c0, %c0_0] : memref<3x3xf32, #tpu.memory_space<vmem>>, vector<3x3xf32>
    %c0_1 = arith.constant 0 : index
    %c0_2 = arith.constant 0 : index
    %1 = vector.load %arg1[%c0_1, %c0_2] : memref<3x3xf32, #tpu.memory_space<vmem>>, vector<3x3xf32>
    %c0_3 = arith.constant 0 : index
    %c0_4 = arith.constant 0 : index
    %2 = vector.load %arg2[%c0_3, %c0_4] : memref<3x3xf32, #tpu.memory_space<vmem>>, vector<3x3xf32>
    %3 = vector.extract_strided_slice %0 {offsets = [0, 0], sizes = [3, 1], strides = [1, 1]} : vector<3x3xf32> to vector<3x1xf32>
    %4 = vector.extract_strided_slice %1 {offsets = [0, 0], sizes = [1, 3], strides = [1, 1]} : vector<3x3xf32> to vector<1x3xf32>
    %5 = vector.broadcast %3 : vector<3x1xf32> to vector<3x3xf32>
    %6 = vector.broadcast %4 : vector<1x3xf32> to vector<3x3xf32>
    %7 = arith.mulf %5, %6 : vector<3x3xf32>
    %8 = vector.extract_strided_slice %0 {offsets = [0, 1], sizes = [3, 1], strides = [1, 1]} : vector<3x3xf32> to vector<3x1xf32>
    %9 = vector.extract_strided_slice %1 {offsets = [1, 0], sizes = [1, 3], strides = [1, 1]} : vector<3x3xf32> to vector<1x3xf32>
    %10 = vector.broadcast %8 : vector<3x1xf32> to vector<3x3xf32>
    %11 = vector.broadcast %9 : vector<1x3xf32> to vector<3x3xf32>
    %12 = arith.mulf %10, %11 : vector<3x3xf32>
    %13 = arith.addf %7, %12 : vector<3x3xf32>
    %14 = vector.extract_strided_slice %0 {offsets = [0, 2], sizes = [3, 1], strides = [1, 1]} : vector<3x3xf32> to vector<3x1xf32>
    %15 = vector.extract_strided_slice %1 {offsets = [2, 0], sizes = [1, 3], strides = [1, 1]} : vector<3x3xf32> to vector<1x3xf32>
    %16 = vector.broadcast %14 : vector<3x1xf32> to vector<3x3xf32>
    %17 = vector.broadcast %15 : vector<1x3xf32> to vector<3x3xf32>
    %18 = arith.mulf %16, %17 : vector<3x3xf32>
    %19 = arith.addf %13, %18 : vector<3x3xf32>
    %20 = vector.extract_strided_slice %19 {offsets = [0, 0], sizes = [3, 1], strides = [1, 1]} : vector<3x3xf32> to vector<3x1xf32>
    %21 = vector.extract_strided_slice %19 {offsets = [0, 0], sizes = [1, 3], strides = [1, 1]} : vector<3x3xf32> to vector<1x3xf32>
    %22 = vector.broadcast %20 : vector<3x1xf32> to vector<3x3xf32>
    %23 = vector.broadcast %21 : vector<1x3xf32> to vector<3x3xf32>
    %24 = arith.mulf %22, %23 : vector<3x3xf32>
    %25 = vector.extract_strided_slice %19 {offsets = [0, 1], sizes = [3, 1], strides = [1, 1]} : vector<3x3xf32> to vector<3x1xf32>
    %26 = vector.extract_strided_slice %19 {offsets = [1, 0], sizes = [1, 3], strides = [1, 1]} : vector<3x3xf32> to vector<1x3xf32>
    %27 = vector.broadcast %25 : vector<3x1xf32> to vector<3x3xf32>
    %28 = vector.broadcast %26 : vector<1x3xf32> to vector<3x3xf32>
    %29 = arith.mulf %27, %28 : vector<3x3xf32>
    %30 = arith.addf %24, %29 : vector<3x3xf32>
    %31 = vector.extract_strided_slice %19 {offsets = [0, 2], sizes = [3, 1], strides = [1, 1]} : vector<3x3xf32> to vector<3x1xf32>
    %32 = vector.extract_strided_slice %19 {offsets = [2, 0], sizes = [1, 3], strides = [1, 1]} : vector<3x3xf32> to vector<1x3xf32>
    %33 = vector.broadcast %31 : vector<3x1xf32> to vector<3x3xf32>
    %34 = vector.broadcast %32 : vector<1x3xf32> to vector<3x3xf32>
    %35 = arith.mulf %33, %34 : vector<3x3xf32>
    %36 = arith.addf %30, %35 : vector<3x3xf32>
    %37 = vector.extract_strided_slice %36 {offsets = [0, 0], sizes = [3, 1], strides = [1, 1]} : vector<3x3xf32> to vector<3x1xf32>
    %38 = vector.extract_strided_slice %36 {offsets = [0, 0], sizes = [1, 3], strides = [1, 1]} : vector<3x3xf32> to vector<1x3xf32>
    %39 = vector.broadcast %37 : vector<3x1xf32> to vector<3x3xf32>
    %40 = vector.broadcast %38 : vector<1x3xf32> to vector<3x3xf32>
    %41 = arith.mulf %39, %40 : vector<3x3xf32>
    %42 = vector.extract_strided_slice %36 {offsets = [0, 1], sizes = [3, 1], strides = [1, 1]} : vector<3x3xf32> to vector<3x1xf32>
    %43 = vector.extract_strided_slice %36 {offsets = [1, 0], sizes = [1, 3], strides = [1, 1]} : vector<3x3xf32> to vector<1x3xf32>
    %44 = vector.broadcast %42 : vector<3x1xf32> to vector<3x3xf32>
    %45 = vector.broadcast %43 : vector<1x3xf32> to vector<3x3xf32>
    %46 = arith.mulf %44, %45 : vector<3x3xf32>
    %47 = arith.addf %41, %46 : vector<3x3xf32>
    %48 = vector.extract_strided_slice %36 {offsets = [0, 2], sizes = [3, 1], strides = [1, 1]} : vector<3x3xf32> to vector<3x1xf32>
    %49 = vector.extract_strided_slice %36 {offsets = [2, 0], sizes = [1, 3], strides = [1, 1]} : vector<3x3xf32> to vector<1x3xf32>
    %50 = vector.broadcast %48 : vector<3x1xf32> to vector<3x3xf32>
    %51 = vector.broadcast %49 : vector<1x3xf32> to vector<3x3xf32>
    %52 = arith.mulf %50, %51 : vector<3x3xf32>
    %53 = arith.addf %47, %52 : vector<3x3xf32>
    %54 = arith.addf %53, %2 : vector<3x3xf32>
    %c0_5 = arith.constant 0 : index
    %c0_6 = arith.constant 0 : index
    %55 = vector.load %arg3[%c0_5, %c0_6] : memref<3x3xf32, #tpu.memory_space<vmem>>, vector<3x3xf32>
    tpu.vector_store %arg3[%c0_5, %c0_6], %54 {strides = array<i32>} : memref<3x3xf32, #tpu.memory_space<vmem>>, vector<3x3xf32>,
    return
  }
}

</mosaic_0001>

<bundles_post_ra>
// kernel: tpu_custom_call.1
= control target key start
LH: loop header
LB: loop body
LE: loop exit
PB: predicated region body
PF: predicated region fallthrough
CT: control target
= control target key end

     0   :  { %8 = vsyncpa [#allocation3], 0  ;;  %s302_s0 = inlined_call_operand.hbm [shape: f32[3,3], index: 0, kind: input, shape index: {}]   ;;  %s303_s1 = inlined_call_operand.hbm [shape: f32[3,3], index: 1, kind: input, shape index: {}]   ;;  %s304_s2 = inlined_call_operand.vmem [shape: f32[3,3], index: 2, kind: input, shape index: {}]   ;;  %s305_s3 = inlined_call_operand.hbm [shape: f32[3,3], index: 3, kind: output, shape index: {}]  }
   0x1   :  { %9 = vsyncpa [#allocation6], 0 }
   0x2   :  { %10 = vsyncpa [#allocation4], 0  ;;  %s237_s12 = smov [#allocation2]   ;;  %s238_s14 = smov [#allocation5]  }
   0x3   :  { %s17_s13 = sshll.u32 %s237_s12, 4  ;;  %s27_s15 = sshll.u32 %s238_s14, 4  ;;  %s18_s13 = int_to_ptr.vmem [resolvable:$true] %s17_s13  ;;  %s28_s15 = int_to_ptr.vmem [resolvable:$true] %s27_s15 }
   0x4   :  { %s165_s18 = scalar_lea.hbm %s302_s0, 64 }
   0x5   :  { %p166_p0 = scmp.ne.s32.totalorder %s302_s0, %s165_s18  ;;  %p169_p1 = scmp.lt.u32.totalorder %s165_s18, %s302_s0 }
   0x7   :  { %p171_p2 = pnand %p169_p1, %p166_p0 }
   0x9   :  { %174 = shalt.err (!%p171_p2)
}
   0xa   :  { %s175_s23 = scalar_lea.vmem %s18_s13, 64  ;;  %p180_p4 = scmp.lt.s32.totalorder %s18_s13, %s18_s13 }
   0xb   :  { %p176_p3 = scmp.ne.s32.totalorder %s18_s13, %s175_s23  ;;  %p181_p5 = scmp.lt.s32.totalorder %s175_s23, %s175_s23 }
   0xd   :  { %p182_p6 = por %p181_p5, %p180_p4 }
   0xf   :  { %p183_p7 = pnand %p182_p6, %p176_p3 }
  0x11   :  { %186 = shalt.err (!%p183_p7)
}
  0x12   :  { %20 = dma.hbm_to_vmem [thread:$0]  %s302_s0, 64, %s18_s13, [#allocation3]  }
  0x13   :  { %s187_s28 = scalar_lea.hbm %s303_s1, 64 }
  0x14   :  { %p188_p8 = scmp.ne.s32.totalorder %s303_s1, %s187_s28  ;;  %p191_p9 = scmp.lt.u32.totalorder %s187_s28, %s303_s1 }
  0x16   :  { %p193_p10 = pnand %p191_p9, %p188_p8 }
  0x18   :  { %196 = shalt.err (!%p193_p10)
}
  0x19   :  { %s197_s6 = scalar_lea.vmem %s28_s15, 64  ;;  %p202_p12 = scmp.lt.s32.totalorder %s28_s15, %s28_s15 }
  0x1a   :  { %p198_p11 = scmp.ne.s32.totalorder %s28_s15, %s197_s6  ;;  %p203_p13 = scmp.lt.s32.totalorder %s197_s6, %s197_s6 }
  0x1c   :  { %p204_p0 = por %p203_p13, %p202_p12 }
  0x1e   :  { %p205_p1 = pnand %p204_p0, %p198_p11 }
  0x20   :  { %208 = shalt.err (!%p205_p1)
}
  0x21   :  { %30 = dma.hbm_to_vmem [thread:$0]  %s303_s1, 64, %s28_s15, [#allocation6]  }
  0x22   :  { %231 = dma.done.wait [#allocation3], 64  }
  0x23   :  { %232 = vsyncadd [#allocation3], 4294967232 }
  0x24   :  { %233 = dma.done.wait [#allocation6], 64  }
  0x25   :  { %234 = vsyncadd [#allocation6], 4294967232  ;;  %v239_v0 = vmov 0   ;;  %v240_v1 = vmov 2   ;;  %v39_v2 = vld [vmem:[#allocation2] sm:$0x7]  ;;  %v47_v4 = vlaneseq }
  0x26   :  { %157 = vset.pattern.permute.xlu0 %v239_v0  ;;  %159 = vset.pattern.permute.xlu1 %v240_v1  ;;  %v241_v3 = vmov 1   ;;  %v40_v9 = vld [vmem:[#allocation5] sm:$0x7]  ;;  %v41_v42 = vld [vmem:[%s304_s2] sm:$0x7]  ;;  %s242_s9 = smov [#allocation7]  }
  0x27   :  { %44 = vperm.xlu0 %157, %v39_v2   ;;  %63 = vperm.xlu1 %159, %v39_v2   ;;  %v48_v5 = vshrl.u32 %v47_v4, 7  ;;  %s141_s10 = sshll.u32 %s242_s9, 4  ;;  %vm133_vm0 = vcmask 18432   ;;  %s142_s10 = int_to_ptr.vmem [resolvable:$true] %s141_s10 }
  0x28   :  { %s209_s11 = scalar_lea.vmem %s142_s10, 64  ;;  %p214_p3 = scmp.lt.s32.totalorder %s142_s10, %s142_s10 }
  0x29   :  { %v49_v6 = vsub.s32 0, %v48_v5  ;;  %v58_v7 = vsub.s32 1, %v48_v5  ;;  %v68_v8 = vsub.s32 2, %v48_v5  ;;  %p210_p2 = scmp.ne.s32.totalorder %s142_s10, %s209_s11  ;;  %p215_p4 = scmp.lt.s32.totalorder %s209_s11, %s209_s11 }
  0x2b   :  { %158 = vset.pattern.permute.xlu0 %v241_v3  ;;  %160 = vset.pattern.permute.xlu1 %v239_v0  ;;  %v50_v11 = vrot.slane %v40_v9, %v49_v6  ;;  %v59_v12 = vrot.slane %v40_v9, %v58_v7  ;;  %v69_v13 = vrot.slane %v40_v9, %v68_v8  ;;  %p216_p5 = por %p215_p4, %p214_p3 }
  0x2c   :  { %53 = vperm.xlu0 %158, %v39_v2  }
  0x2d   :  { %p217_p6 = pnand %p216_p5, %p210_p2 }
  0x30   :  { %162 = vset.pattern.permute.xlu0 %v240_v1 }
  0xa6   :  { %v45_v10 = vpop.permute.xlu0 %44  ;;  %v64_v14 = vpop.permute.xlu1 %63 }
  0xa7   :  { %v51_v16 = vmul.f32 %v50_v11, %v45_v10  ;;  %v70_v18 = vmul.f32 %v69_v13, %v64_v14 }
  0xab   :  { %v54_v15 = vpop.permute.xlu0 %53 }
  0xac   :  { %v60_v17 = vmul.f32 %v59_v12, %v54_v15 }
  0xae   :  { %v61_v19 = vadd.f32 %v60_v17, %v51_v16 }
  0xb0   :  { %v71_v20 = vadd.f32 %v70_v18, %v61_v19 }
  0xb2   :  { %93 = vperm.xlu0 %162, %v71_v20   ;;  %74 = vperm.xlu1 %160, %v71_v20   ;;  %v80_v22 = vrot.slane %v71_v20, %v49_v6  ;;  %v89_v23 = vrot.slane %v71_v20, %v58_v7  ;;  %v99_v26 = vrot.slane %v71_v20, %v68_v8 }
  0xb6   :  { %161 = vset.pattern.permute.xlu1 %v241_v3 }
  0xb7   :  { %83 = vperm.xlu1 %161, %v71_v20  }
  0xbb   :  { %163 = vset.pattern.permute.xlu1 %v239_v0 }
 0x131   :  { %v75_v21 = vpop.permute.xlu1 %74  ;;  %v94_v24 = vpop.permute.xlu0 %93 }
 0x132   :  { %v81_v27 = vmul.f32 %v80_v22, %v75_v21  ;;  %v100_v29 = vmul.f32 %v99_v26, %v94_v24 }
 0x136   :  { %v84_v25 = vpop.permute.xlu1 %83 }
 0x137   :  { %v90_v28 = vmul.f32 %v89_v23, %v84_v25 }
 0x139   :  { %v91_v30 = vadd.f32 %v90_v28, %v81_v27 }
 0x13b   :  { %v101_v31 = vadd.f32 %v100_v29, %v91_v30 }
 0x13d   :  { %123 = vperm.xlu0 %162, %v101_v31   ;;  %104 = vperm.xlu1 %163, %v101_v31   ;;  %v110_v33 = vrot.slane %v101_v31, %v49_v6  ;;  %v119_v34 = vrot.slane %v101_v31, %v58_v7  ;;  %v129_v37 = vrot.slane %v101_v31, %v68_v8 }
 0x141   :  { %164 = vset.pattern.permute.xlu1 %v241_v3 }
 0x142   :  { %113 = vperm.xlu1 %164, %v101_v31  }
 0x1bc   :  { %v105_v32 = vpop.permute.xlu1 %104  ;;  %v124_v35 = vpop.permute.xlu0 %123 }
 0x1bd   :  { %v111_v38 = vmul.f32 %v110_v33, %v105_v32  ;;  %v130_v40 = vmul.f32 %v129_v37, %v124_v35 }
 0x1c1   :  { %v114_v36 = vpop.permute.xlu1 %113 }
 0x1c2   :  { %v120_v39 = vmul.f32 %v119_v34, %v114_v36 }
 0x1c4   :  { %v121_v41 = vadd.f32 %v120_v39, %v111_v38 }
 0x1c6   :  { %v131_v43 = vadd.f32 %v130_v40, %v121_v41 }
 0x1c8   :  { %v132_v44 = vadd.f32 %v131_v43, %v41_v42 }
 0x1ca   :  { %134 = vst.msk [vmem:[#allocation7] sm:$0x7] %vm133_vm0, %v132_v44 }
 0x1cb   :  { %220 = shalt.err (!%p217_p6)
}
 0x1cc   :  { %s221_s14 = scalar_lea.hbm %s305_s3, 64 }
 0x1cd   :  { %p222_p7 = scmp.ne.s32.totalorder %s305_s3, %s221_s14  ;;  %p225_p8 = scmp.lt.u32.totalorder %s221_s14, %s305_s3 }
 0x1cf   :  { %p227_p9 = pnand %p225_p8, %p222_p7 }
 0x1d1   :  { %230 = shalt.err (!%p227_p9)
}
 0x1d2   :  { %144 = dma.vmem_to_hbm [thread:$0]  %s142_s10, 64, %s305_s3, [#allocation4]  }
 0x1d3   :  { %235 = dma.done.wait [#allocation4], 64  }
 0x1d4   :  { %236 = vsyncadd [#allocation4], 4294967232 }
 0x1d5   :  { %148 = vsyncpa [#allocation3], 1 }
 0x1d6   :  { %149 = vsyncpa [#allocation6], 1 }
 0x1d7   :  { %150 = vsyncpa [#allocation4], 1 }

</bundles_post_ra>
